<compile_context>
chip_gen: v6e
topology: v6e:2x2x1
jax: 0.10.0
libtpu: 0.0.40
codegen_flags: <defaults>
</compile_context>

<pallas_src>
import jax
import jax.numpy as jnp
from jax.experimental import pallas as pl
from jax.experimental.pallas import tpu as pltpu

NUM_CLASSES = 6
NUM_DOMAIN = 4
FEAT_DIM = 240          # Flatten of (15, 4, 4) feature maps -> Linear(240, .)
FEAT_PAD = 256          # pad to 2 full 128-lane MXU passes
HEAD_W = 128            # fused head weight lane width (lane-dense)
OUT_W = 128             # lane-dense output slab width
DOM_BLK = 8             # 8-lane block per domain (6 classes + 2 pad lanes)
COND_W = NUM_DOMAIN * DOM_BLK   # 32 lanes for the conditional block
BATCH_TILE = 16         # rows per grid step (bf16 sublane packing)

# Fused-head column layout (all 8-lane aligned).
HC_CLS = 0                       # [0:8)    class logits (+2 pad)
HC_MARG = 8                      # [8:16)   marginal logits (+4 pad)
HC_REP = 16                      # [16:48)  class logit c at lane d*8+c
HC_TILE = HC_REP + COND_W        # [48:80)  (f @ Wd)[d] at lane d*8+c
HC_BD = HC_TILE + COND_W         # [80:112) bd[d] at lane d*8+c (bias only)

# Output slab column layout.
OUT_CLS = 0                      # [0:6)    class logits
OUT_MARG = 8                     # [8:12)   marginal softmax
OUT_COND = 16                    # [16:48)  conditional softmax, lane d*8+c


def djdan_kernel(x_ref, we_ref, be_ref, wh_ref, bh_ref, out_ref):
    # ---- EmbeddingBlock stand-in: linear + ReLU -> (rows, FEAT_PAD) f32 ----
    f = jnp.dot(x_ref[...], we_ref[...],
                preferred_element_type=jnp.float32) + be_ref[...]
    f = jnp.maximum(f, 0.0)

    # ---- single fused head matmul (256 x 128, lane-dense) ----
    heads = jnp.dot(f.astype(jnp.bfloat16), wh_ref[...],
                    preferred_element_type=jnp.float32) + bh_ref[...]
    rows = heads.shape[0]

    cls8 = heads[:, HC_CLS:HC_CLS + DOM_BLK]          # (rows, 8) logits + 2 zero pads
    ml = heads[:, HC_MARG:HC_MARG + NUM_DOMAIN]       # (rows, 4) marginal logits

    # ---- marginal_discriminator: softmax(ml) ----
    mm = jnp.max(ml, axis=-1, keepdims=True)
    em = jnp.exp(ml - mm)
    marg = em * pl.reciprocal(jnp.sum(em, axis=-1, keepdims=True), approx=False)

    # ---- conditional_discriminator, fully vectorized ----
    # (f * pc) @ Wd + bd == pc * (f @ Wd) + bd ; the matmul part is already in
    # `heads`, so dl[:, d*8+c] = cl[c] * g[d] + bd[d] is one VPU pass.
    dl = (heads[:, HC_REP:HC_REP + COND_W]
          * heads[:, HC_TILE:HC_TILE + COND_W]
          + heads[:, HC_BD:HC_BD + COND_W])           # (rows, 32)
    b0, b1 = dl[:, 0:DOM_BLK], dl[:, DOM_BLK:2 * DOM_BLK]
    b2, b3 = dl[:, 2 * DOM_BLK:3 * DOM_BLK], dl[:, 3 * DOM_BLK:4 * DOM_BLK]
    gmax = jnp.maximum(jnp.maximum(b0, b1), jnp.maximum(b2, b3))   # (rows, 8)
    max_t = jnp.concatenate([gmax, gmax, gmax, gmax], axis=1)      # (rows, 32)
    e = jnp.exp(dl - max_t)
    gsum = (e[:, 0:DOM_BLK] + e[:, DOM_BLK:2 * DOM_BLK]) + \
           (e[:, 2 * DOM_BLK:3 * DOM_BLK] + e[:, 3 * DOM_BLK:4 * DOM_BLK])
    sum_t = jnp.concatenate([gsum, gsum, gsum, gsum], axis=1)
    cond = e * pl.reciprocal(sum_t, approx=False)                  # (rows, 32)

    # ---- assemble slab in registers, single lane-dense store ----
    z_mid = jnp.zeros((rows, OUT_COND - OUT_MARG - NUM_DOMAIN), jnp.float32)
    z_tail = jnp.zeros((rows, OUT_W - OUT_COND - COND_W), jnp.float32)
    out_ref[...] = jnp.concatenate([cls8, marg, z_mid, cond, z_tail], axis=1)


@jax.jit
def djdan_forward(x, packed):
    """Returns (class_logits (B,6), cond_stack (6,B,4), marginal (B,4)).

    cond_stack[c] corresponds to conditional_logits[c] of the PyTorch module.
    """
    we_p, be_p, wh, bh = packed
    B = x.shape[0]
    d_in = x.shape[1] * x.shape[2] * x.shape[3]
    x_flat = x.reshape(B, -1).astype(jnp.bfloat16)     # PMM treated as identity
    Bp = ((B + BATCH_TILE - 1) // BATCH_TILE) * BATCH_TILE
    x_pad = jnp.pad(x_flat, ((0, Bp - B), (0, 0)))

    slab = pl.pallas_call(
        djdan_kernel,
        out_shape=jax.ShapeDtypeStruct((Bp, OUT_W), jnp.float32),
        grid=(Bp // BATCH_TILE,),
        in_specs=[
            pl.BlockSpec((BATCH_TILE, d_in), lambda i: (i, 0)),   # x tile
            pl.BlockSpec((d_in, FEAT_PAD), lambda i: (0, 0)),     # we (resident)
            pl.BlockSpec((1, FEAT_PAD), lambda i: (0, 0)),        # be
            pl.BlockSpec((FEAT_PAD, HEAD_W), lambda i: (0, 0)),   # fused head W
            pl.BlockSpec((1, HEAD_W), lambda i: (0, 0)),          # fused head b
        ],
        out_specs=pl.BlockSpec((BATCH_TILE, OUT_W), lambda i: (i, 0)),
        compiler_params=pltpu.CompilerParams(
            dimension_semantics=("parallel",)),
    )(x_pad, we_p, be_p, wh, bh)

    class_logits = slab[:B, OUT_CLS:OUT_CLS + NUM_CLASSES]
    marginal = slab[:B, OUT_MARG:OUT_MARG + NUM_DOMAIN]
    cond = slab[:B, OUT_COND:OUT_COND + COND_W]                    # (B, 32)
    cond_stack = cond.reshape(B, NUM_DOMAIN, DOM_BLK)[:, :, :NUM_CLASSES]
    cond_stack = jnp.transpose(cond_stack, (2, 0, 1))              # (6, B, 4)
    return class_logits, cond_stack, marginal


def make_params(key, d_in):
    """Logical (PyTorch-like) f32 parameters."""
    ks = jax.random.split(key, 8)

    def lin(kw, kb, fan_in, fan_out):
        bound = 1.0 / jnp.sqrt(fan_in)
        w = jax.random.uniform(kw, (fan_in, fan_out), jnp.float32, -bound, bound)
        b = jax.random.uniform(kb, (fan_out,), jnp.float32, -bound, bound)
        return w, b

    we, be = lin(ks[0], ks[1], d_in, FEAT_DIM)        # EmbeddingBlock stand-in
    wc, bc = lin(ks[2], ks[3], FEAT_DIM, NUM_CLASSES) # class_classifier
    wd, bd = lin(ks[4], ks[5], FEAT_DIM, NUM_DOMAIN)  # conditional_discriminator
    wm, bm = lin(ks[6], ks[7], FEAT_DIM, NUM_DOMAIN)  # marginal_discriminator
    return (we, be, wc, bc, wd, bd, wm, bm)


def pack_params(params):
    """Pack logical params into the padded/fused bf16 kernel operands."""
    we, be, wc, bc, wd, bd, wm, bm = params
    d_in = we.shape[0]

    we_p = jnp.zeros((d_in, FEAT_PAD), jnp.float32).at[:, :FEAT_DIM].set(we)
    we_p = we_p.astype(jnp.bfloat16)
    be_p = jnp.zeros((1, FEAT_PAD), jnp.float32).at[0, :FEAT_DIM].set(be)

    wh = jnp.zeros((FEAT_PAD, HEAD_W), jnp.float32)
    bh = jnp.zeros((1, HEAD_W), jnp.float32)
    # class head
    wh = wh.at[:FEAT_DIM, HC_CLS:HC_CLS + NUM_CLASSES].set(wc)
    bh = bh.at[0, HC_CLS:HC_CLS + NUM_CLASSES].set(bc)
    # marginal head
    wh = wh.at[:FEAT_DIM, HC_MARG:HC_MARG + NUM_DOMAIN].set(wm)
    bh = bh.at[0, HC_MARG:HC_MARG + NUM_DOMAIN].set(bm)
    # conditional head, domain-major 8-lane blocks: lane d*8+c
    for d in range(NUM_DOMAIN):
        base = d * DOM_BLK
        # REP: class logits (wc columns + bc bias), repeated per domain block
        wh = wh.at[:FEAT_DIM, HC_REP + base:HC_REP + base + NUM_CLASSES].set(wc)
        bh = bh.at[0, HC_REP + base:HC_REP + base + NUM_CLASSES].set(bc)
        # TILE: g[d] = f @ wd[:, d] replicated across the 6 class lanes
        wh = wh.at[:FEAT_DIM, HC_TILE + base:HC_TILE + base + NUM_CLASSES].set(
            jnp.broadcast_to(wd[:, d:d + 1], (FEAT_DIM, NUM_CLASSES)))
        # BD: conditional bias bd[d] (applied AFTER the pc scaling -> bias only)
        bh = bh.at[0, HC_BD + base:HC_BD + base + NUM_CLASSES].set(bd[d])

    return (we_p, be_p, wh.astype(jnp.bfloat16), bh)


def djdan_reference(x, params):
    """Pure-JAX reference using the ORIGINAL computation order (f*pc)@Wd."""
    we, be, wc, bc, wd, bd, wm, bm = params
    B = x.shape[0]
    xf = x.reshape(B, -1)
    f = jnp.dot(xf.astype(jnp.bfloat16), we.astype(jnp.bfloat16),
                preferred_element_type=jnp.float32) + be
    f = jnp.maximum(f, 0.0)
    fb = f.astype(jnp.bfloat16)
    cl = jnp.dot(fb, wc.astype(jnp.bfloat16), preferred_element_type=jnp.float32) + bc
    ml = jnp.dot(fb, wm.astype(jnp.bfloat16), preferred_element_type=jnp.float32) + bm
    marg = jax.nn.softmax(ml, axis=-1)
    conds = []
    for c in range(NUM_CLASSES):
        pc = cl[:, c:c + 1]                               # raw detached logit column
        pf = (f * pc).astype(jnp.bfloat16)                # product_operator
        dl = jnp.dot(pf, wd.astype(jnp.bfloat16),
                     preferred_element_type=jnp.float32) + bd
        conds.append(jax.nn.softmax(dl, axis=-1))
    return cl, jnp.stack(conds, axis=0), marg


if __name__ == "__main__":
    key = jax.random.PRNGKey(0)
    kx, kp = jax.random.split(key)

    B, C, H, W = 2, 4, 16, 16
    x = jax.random.normal(kx, (B, C, H, W), jnp.float32)   # NCHW, as in PyTorch
    params = make_params(kp, C * H * W)
    packed = pack_params(params)

    class_logits, cond_stack, marginal_logits = djdan_forward(x, packed)
    jax.block_until_ready(class_logits)
    jax.block_until_ready(cond_stack)
    jax.block_until_ready(marginal_logits)

    assert class_logits.shape == (B, NUM_CLASSES)
    assert cond_stack.shape == (NUM_CLASSES, B, NUM_DOMAIN)
    assert marginal_logits.shape == (B, NUM_DOMAIN)

    # Sanity: softmax outputs sum to 1 (exact reciprocal -> tight tolerance).
    assert bool(jnp.allclose(jnp.sum(marginal_logits, -1), 1.0, atol=1e-4))
    assert bool(jnp.allclose(jnp.sum(cond_stack, -1), 1.0, atol=1e-4))

    # Correctness vs the original (unfused, per-class matmul) computation order.
    cl_ref, cond_ref, marg_ref = djdan_reference(x, params)
    assert bool(jnp.allclose(class_logits, cl_ref, rtol=2e-2, atol=2e-2))
    assert bool(jnp.allclose(marginal_logits, marg_ref, rtol=2e-2, atol=2e-2))
    assert bool(jnp.allclose(cond_stack, cond_ref, rtol=2e-2, atol=2e-2))

    print("KERNEL_OK")
</pallas_src>

<mosaic_0001>
module attributes {stable_mosaic.version = 11 : i64} {
  func.func @djdan_kernel(%arg0: i32, %arg1: memref<16x1024xbf16, #tpu.memory_space<vmem>>, %arg2: memref<1024x256xbf16, #tpu.memory_space<vmem>>, %arg3: memref<1x256xf32, #tpu.memory_space<vmem>>, %arg4: memref<256x128xbf16, #tpu.memory_space<vmem>>, %arg5: memref<1x128xf32, #tpu.memory_space<vmem>>, %arg6: memref<16x128xf32, #tpu.memory_space<vmem>>) attributes {dimension_semantics = [#tpu.dimension_semantics<parallel>], iteration_bounds = array<i64: 1>, scalar_prefetch = 0 : i64, scratch_operands = 0 : i64, tpu.core_type = #tpu.core_type<tc>, window_params = [{transform_indices = @transform_0, window_bounds = array<i64: 16, 1024>}, {pipeline_mode = #tpu.pipeline_mode<synchronous>, transform_indices = @transform_1, window_bounds = array<i64: 1024, 256>}, {pipeline_mode = #tpu.pipeline_mode<synchronous>, transform_indices = @transform_2, window_bounds = array<i64: 1, 256>}, {pipeline_mode = #tpu.pipeline_mode<synchronous>, transform_indices = @transform_3, window_bounds = array<i64: 256, 128>}, {pipeline_mode = #tpu.pipeline_mode<synchronous>, transform_indices = @transform_4, window_bounds = array<i64: 1, 128>}, {transform_indices = @transform_5, window_bounds = array<i64: 16, 128>}]} {
    %c0 = arith.constant 0 : index
    %c0_0 = arith.constant 0 : index
    %0 = vector.load %arg1[%c0, %c0_0] : memref<16x1024xbf16, #tpu.memory_space<vmem>>, vector<16x1024xbf16>
    %c0_1 = arith.constant 0 : index
    %c0_2 = arith.constant 0 : index
    %1 = vector.load %arg2[%c0_1, %c0_2] : memref<1024x256xbf16, #tpu.memory_space<vmem>>, vector<1024x256xbf16>
    %cst = arith.constant dense<0.000000e+00> : vector<16x256xf32>
    %2 = tpu.matmul %0, %1, %cst {dimension_numbers = #tpu.dot_dimension_numbers<[1], [0], [0], [1], [0, 0, 1, 1], [], []>} : vector<16x1024xbf16>, vector<1024x256xbf16>, vector<16x256xf32> -> vector<16x256xf32>
    %c0_3 = arith.constant 0 : index
    %c0_4 = arith.constant 0 : index
    %3 = vector.load %arg3[%c0_3, %c0_4] : memref<1x256xf32, #tpu.memory_space<vmem>>, vector<1x256xf32>
    %4 = vector.broadcast %3 : vector<1x256xf32> to vector<16x256xf32>
    %5 = arith.addf %2, %4 : vector<16x256xf32>
    %cst_5 = arith.constant 0.000000e+00 : f32
    %6 = vector.broadcast %cst_5 : f32 to vector<16x256xf32>
    %7 = arith.maximumf %5, %6 : vector<16x256xf32>
    %8 = arith.truncf %7 : vector<16x256xf32> to vector<16x256xbf16>
    %c0_6 = arith.constant 0 : index
    %c0_7 = arith.constant 0 : index
    %9 = vector.load %arg4[%c0_6, %c0_7] : memref<256x128xbf16, #tpu.memory_space<vmem>>, vector<256x128xbf16>
    %cst_8 = arith.constant dense<0.000000e+00> : vector<16x128xf32>
    %10 = tpu.matmul %8, %9, %cst_8 {dimension_numbers = #tpu.dot_dimension_numbers<[1], [0], [0], [1], [0, 0, 1, 1], [], []>} : vector<16x256xbf16>, vector<256x128xbf16>, vector<16x128xf32> -> vector<16x128xf32>
    %c0_9 = arith.constant 0 : index
    %c0_10 = arith.constant 0 : index
    %11 = vector.load %arg5[%c0_9, %c0_10] : memref<1x128xf32, #tpu.memory_space<vmem>>, vector<1x128xf32>
    %12 = vector.broadcast %11 : vector<1x128xf32> to vector<16x128xf32>
    %13 = arith.addf %10, %12 : vector<16x128xf32>
    %14 = vector.extract_strided_slice %13 {offsets = [0, 0], sizes = [16, 8], strides = [1, 1]} : vector<16x128xf32> to vector<16x8xf32>
    %15 = vector.extract_strided_slice %13 {offsets = [0, 8], sizes = [16, 4], strides = [1, 1]} : vector<16x128xf32> to vector<16x4xf32>
    %cst_11 = arith.constant dense<0xFF800000> : vector<16xf32>
    %16 = vector.multi_reduction <maximumf>, %15, %cst_11 [1] : vector<16x4xf32> to vector<16xf32>
    %17 = vector.shape_cast %16 : vector<16xf32> to vector<16x1xf32>
    %18 = vector.broadcast %17 : vector<16x1xf32> to vector<16x4xf32>
    %19 = arith.subf %15, %18 : vector<16x4xf32>
    %20 = math.exp %19 : vector<16x4xf32>
    %cst_12 = arith.constant dense<0.000000e+00> : vector<16xf32>
    %21 = vector.multi_reduction <add>, %20, %cst_12 [1] : vector<16x4xf32> to vector<16xf32>
    %22 = vector.shape_cast %21 : vector<16xf32> to vector<16x1xf32>
    %23 = tpu.reciprocal %22 : vector<16x1xf32> -> vector<16x1xf32>
    %24 = vector.broadcast %23 : vector<16x1xf32> to vector<16x4xf32>
    %25 = arith.mulf %20, %24 : vector<16x4xf32>
    %26 = vector.extract_strided_slice %13 {offsets = [0, 16], sizes = [16, 32], strides = [1, 1]} : vector<16x128xf32> to vector<16x32xf32>
    %27 = vector.extract_strided_slice %13 {offsets = [0, 48], sizes = [16, 32], strides = [1, 1]} : vector<16x128xf32> to vector<16x32xf32>
    %28 = arith.mulf %26, %27 : vector<16x32xf32>
    %29 = vector.extract_strided_slice %13 {offsets = [0, 80], sizes = [16, 32], strides = [1, 1]} : vector<16x128xf32> to vector<16x32xf32>
    %30 = arith.addf %28, %29 : vector<16x32xf32>
    %31 = vector.extract_strided_slice %30 {offsets = [0, 0], sizes = [16, 8], strides = [1, 1]} : vector<16x32xf32> to vector<16x8xf32>
    %32 = vector.extract_strided_slice %30 {offsets = [0, 8], sizes = [16, 8], strides = [1, 1]} : vector<16x32xf32> to vector<16x8xf32>
    %33 = vector.extract_strided_slice %30 {offsets = [0, 16], sizes = [16, 8], strides = [1, 1]} : vector<16x32xf32> to vector<16x8xf32>
    %34 = vector.extract_strided_slice %30 {offsets = [0, 24], sizes = [16, 8], strides = [1, 1]} : vector<16x32xf32> to vector<16x8xf32>
    %35 = arith.maximumf %31, %32 : vector<16x8xf32>
    %36 = arith.maximumf %33, %34 : vector<16x8xf32>
    %37 = arith.maximumf %35, %36 : vector<16x8xf32>
    %38 = tpu.concatenate %37, %37, %37, %37 in 1 : vector<16x8xf32>, vector<16x8xf32>, vector<16x8xf32>, vector<16x8xf32> -> vector<16x32xf32>
    %39 = arith.subf %30, %38 : vector<16x32xf32>
    %40 = math.exp %39 : vector<16x32xf32>
    %41 = vector.extract_strided_slice %40 {offsets = [0, 0], sizes = [16, 8], strides = [1, 1]} : vector<16x32xf32> to vector<16x8xf32>
    %42 = vector.extract_strided_slice %40 {offsets = [0, 8], sizes = [16, 8], strides = [1, 1]} : vector<16x32xf32> to vector<16x8xf32>
    %43 = arith.addf %41, %42 : vector<16x8xf32>
    %44 = vector.extract_strided_slice %40 {offsets = [0, 16], sizes = [16, 8], strides = [1, 1]} : vector<16x32xf32> to vector<16x8xf32>
    %45 = vector.extract_strided_slice %40 {offsets = [0, 24], sizes = [16, 8], strides = [1, 1]} : vector<16x32xf32> to vector<16x8xf32>
    %46 = arith.addf %44, %45 : vector<16x8xf32>
    %47 = arith.addf %43, %46 : vector<16x8xf32>
    %48 = tpu.concatenate %47, %47, %47, %47 in 1 : vector<16x8xf32>, vector<16x8xf32>, vector<16x8xf32>, vector<16x8xf32> -> vector<16x32xf32>
    %49 = tpu.reciprocal %48 : vector<16x32xf32> -> vector<16x32xf32>
    %50 = arith.mulf %40, %49 : vector<16x32xf32>
    %cst_13 = arith.constant 0.000000e+00 : f32
    %51 = vector.broadcast %cst_13 : f32 to vector<16x4xf32>
    %cst_14 = arith.constant 0.000000e+00 : f32
    %52 = vector.broadcast %cst_14 : f32 to vector<16x80xf32>
    %53 = tpu.concatenate %14, %25, %51, %50, %52 in 1 : vector<16x8xf32>, vector<16x4xf32>, vector<16x4xf32>, vector<16x32xf32>, vector<16x80xf32> -> vector<16x128xf32>
    %c0_15 = arith.constant 0 : index
    %c0_16 = arith.constant 0 : index
    %54 = vector.load %arg6[%c0_15, %c0_16] : memref<16x128xf32, #tpu.memory_space<vmem>>, vector<16x128xf32>
    tpu.vector_store %arg6[%c0_15, %c0_16], %53 {strides = array<i32>} : memref<16x128xf32, #tpu.memory_space<vmem>>, vector<16x128xf32>,
    return
  }
  func.func @transform_0(%arg0: i32) -> (i32, i32) {
    %c0_i32 = arith.constant 0 : i32
    %c0_i32_0 = arith.constant 0 : i32
    return %arg0, %c0_i32 : i32, i32
  }
  func.func @transform_1(%arg0: i32) -> (i32, i32) {
    %c0_i32 = arith.constant 0 : i32
    %c0_i32_0 = arith.constant 0 : i32
    %c0_i32_1 = arith.constant 0 : i32
    return %c0_i32, %c0_i32_0 : i32, i32
  }
  func.func @transform_2(%arg0: i32) -> (i32, i32) {
    %c0_i32 = arith.constant 0 : i32
    %c0_i32_0 = arith.constant 0 : i32
    %c0_i32_1 = arith.constant 0 : i32
    return %c0_i32, %c0_i32_0 : i32, i32
  }
  func.func @transform_3(%arg0: i32) -> (i32, i32) {
    %c0_i32 = arith.constant 0 : i32
    %c0_i32_0 = arith.constant 0 : i32
    %c0_i32_1 = arith.constant 0 : i32
    return %c0_i32, %c0_i32_0 : i32, i32
  }
  func.func @transform_4(%arg0: i32) -> (i32, i32) {
    %c0_i32 = arith.constant 0 : i32
    %c0_i32_0 = arith.constant 0 : i32
    %c0_i32_1 = arith.constant 0 : i32
    return %c0_i32, %c0_i32_0 : i32, i32
  }
  func.func @transform_5(%arg0: i32) -> (i32, i32) {
    %c0_i32 = arith.constant 0 : i32
    %c0_i32_0 = arith.constant 0 : i32
    return %arg0, %c0_i32 : i32, i32
  }
}

</mosaic_0001>

<bundles_post_ra>
// kernel: djdan_forward.1
= control target key start
LH: loop header
LB: loop body
LE: loop exit
PB: predicated region body
PF: predicated region fallthrough
CT: control target
= control target key end

     0   :  { %10 = vsyncpa [#allocation3], 0  ;;  %s1834_s18 = smov [#allocation2]   ;;  %s2044_s0 = inlined_call_operand.vmem [shape: bf16[16,1024], index: 0, kind: input, shape index: {}]   ;;  %s2045_s1 = inlined_call_operand.hbm [shape: bf16[1024,256], index: 1, kind: input, shape index: {}]   ;;  %s2046_s2 = inlined_call_operand.vmem [shape: f32[1,256], index: 2, kind: input, shape index: {}]   ;;  %s2047_s3 = inlined_call_operand.vmem [shape: bf16[256,128], index: 3, kind: input, shape index: {}]   ;;  %s2048_s4 = inlined_call_operand.vmem [shape: f32[1,128], index: 4, kind: input, shape index: {}]   ;;  %s2049_s5 = inlined_call_operand.vmem [shape: f32[16,128], index: 5, kind: output, shape index: {}]  }
   0x1   :  { %s18_s19 = sshll.u32 %s1834_s18, 4  ;;  %s19_s19 = int_to_ptr.vmem [resolvable:$true] %s18_s19 }
   0x2   :  { %s1820_s20 = scalar_lea.vmem %s19_s19, 16384  ;;  %p1825_p1 = scmp.lt.s32.totalorder %s19_s19, %s19_s19 }
   0x3   :  { %p1821_p0 = scmp.ne.s32.totalorder %s19_s19, %s1820_s20  ;;  %p1826_p2 = scmp.lt.s32.totalorder %s1820_s20, %s1820_s20 }
   0x5   :  { %p1827_p3 = por %p1826_p2, %p1825_p1 }
   0x7   :  { %p1828_p4 = pnand %p1827_p3, %p1821_p0 }
   0x9   :  { %1831 = shalt.err (!%p1828_p4)
}
   0xa   :  { %s1835_s21 = smov 128   ;;  %s1836_s22 = smov 8  }
   0xb   :  { %24 = dma.hbm_to_vmem [thread:$0]  %s2045_s1, 16384, %s19_s19, [#allocation3], %s1835_s21, %s1835_s21, %s1836_s22  }
   0xc   :  { %1832 = dma.done.wait [#allocation3], 16384  }
   0xd   :  { %1833 = vsyncadd [#allocation3], 4294950912  ;;  %v1588_v0 = vld [vmem:[#allocation2 + $0x74] ss:$8 sps:$4 sm:$0xff]   ;;  %v1592_v2 = vld [vmem:[#allocation2 + $0x70] ss:$8 sps:$4 sm:$0xff]  }
   0xe   :  { %v1590_v1 = vld [vmem:[#allocation2 + $0x174] ss:$8 sps:$4 sm:$0xff]   ;;  %863 = vmatprep.subr.bf16.mxu0 %v1588_v0  ;;  %v1593_v3 = vld [vmem:[#allocation2 + $0x170] ss:$8 sps:$4 sm:$0xff]   ;;  %v1594_v4 = vld [vmem:[#allocation2 + $0x64] ss:$8 sps:$4 sm:$0xff]  }
   0xf   :  { %906 = vmatprep.subr.bf16.mxu1 %v1590_v1  ;;  %864 = vmatpush1.bf16.msra.mxu0 %v1592_v2  ;;  %v1596_v5 = vld [vmem:[#allocation2 + $0x164] ss:$8 sps:$4 sm:$0xff]   ;;  %v1598_v6 = vld [vmem:[#allocation2 + $0x60] ss:$8 sps:$4 sm:$0xff]   ;;  %v1600_v8 = vld [vmem:[#allocation2 + $0x54] ss:$8 sps:$4 sm:$0xff]  }
  0x10   :  { %907 = vmatpush1.bf16.msra.mxu1 %v1593_v3  ;;  %865 = vmatprep.subr.bf16.mxu0 %v1594_v4  ;;  %v1599_v7 = vld [vmem:[#allocation2 + $0x160] ss:$8 sps:$4 sm:$0xff]   ;;  %v1602_v9 = vld [vmem:[#allocation2 + $0x154] ss:$8 sps:$4 sm:$0xff]   ;;  %v1604_v10 = vld [vmem:[#allocation2 + $0x50] ss:$8 sps:$4 sm:$0xff]  }
  0x11   :  { %908 = vmatprep.subr.bf16.mxu1 %v1596_v5  ;;  %v1605_v11 = vld [vmem:[#allocation2 + $0x150] ss:$8 sps:$4 sm:$0xff]   ;;  %v1606_v12 = vld [vmem:[#allocation2 + $0x44] ss:$8 sps:$4 sm:$0xff]   ;;  %v1610_v14 = vld [vmem:[#allocation2 + $0x40] ss:$8 sps:$4 sm:$0xff]  }
  0x12   :  { %v1608_v13 = vld [vmem:[#allocation2 + $0x144] ss:$8 sps:$4 sm:$0xff]   ;;  %v1611_v15 = vld [vmem:[#allocation2 + $0x140] ss:$8 sps:$4 sm:$0xff]   ;;  %v1612_v16 = vld [vmem:[#allocation2 + $0x34] ss:$8 sps:$4 sm:$0xff]  }
  0x13   :  { %866 = vmatpush1.bf16.msra.mxu0 %v1598_v6  ;;  %v1614_v17 = vld [vmem:[#allocation2 + $0x134] ss:$8 sps:$4 sm:$0xff]   ;;  %v1616_v18 = vld [vmem:[#allocation2 + $0x30] ss:$8 sps:$4 sm:$0xff]   ;;  %v1618_v20 = vld [vmem:[#allocation2 + $0x24] ss:$8 sps:$4 sm:$0xff]  }
  0x14   :  { %909 = vmatpush1.bf16.msra.mxu1 %v1599_v7  ;;  %867 = vmatprep.subr.bf16.mxu0 %v1600_v8  ;;  %v1617_v19 = vld [vmem:[#allocation2 + $0x130] ss:$8 sps:$4 sm:$0xff]   ;;  %v1620_v21 = vld [vmem:[#allocation2 + $0x124] ss:$8 sps:$4 sm:$0xff]   ;;  %v1622_v22 = vld [vmem:[#allocation2 + $0x20] ss:$8 sps:$4 sm:$0xff]  }
  0x15   :  { %910 = vmatprep.subr.bf16.mxu1 %v1602_v9  ;;  %v1623_v23 = vld [vmem:[#allocation2 + $0x120] ss:$8 sps:$4 sm:$0xff]   ;;  %v1624_v24 = vld [vmem:[#allocation2 + $0x14] ss:$8 sps:$4 sm:$0xff]   ;;  %v1628_v26 = vld [vmem:[#allocation2 + $0x10] ss:$8 sps:$4 sm:$0xff]  }
  0x16   :  { %v1626_v25 = vld [vmem:[#allocation2 + $0x114] ss:$8 sps:$4 sm:$0xff]   ;;  %v1629_v27 = vld [vmem:[#allocation2 + $0x110] ss:$8 sps:$4 sm:$0xff]   ;;  %v1630_v28 = vld [vmem:[#allocation2 + $0x4] ss:$8 sps:$4 sm:$0xff]  }
  0x17   :  { %868 = vmatpush1.bf16.msra.mxu0 %v1604_v10  ;;  %v1632_v29 = vld [vmem:[#allocation2 + $0x104] ss:$8 sps:$4 sm:$0xff]   ;;  %v1634_v30 = vld [vmem:[#allocation2] ss:$8 sps:$4 sm:$0xff]   ;;  %v1636_v32 = vld [vmem:[#allocation2 + $0xf4] ss:$8 sps:$4 sm:$0xff]  }
  0x18   :  { %911 = vmatpush1.bf16.msra.mxu1 %v1605_v11  ;;  %869 = vmatprep.subr.bf16.mxu0 %v1606_v12  ;;  %v1635_v31 = vld [vmem:[#allocation2 + $0x100] ss:$8 sps:$4 sm:$0xff]   ;;  %v1638_v33 = vld [vmem:[#allocation2 + $0x1f4] ss:$8 sps:$4 sm:$0xff]   ;;  %v1640_v34 = vld [vmem:[#allocation2 + $0xf0] ss:$8 sps:$4 sm:$0xff]  }
  0x19   :  { %912 = vmatprep.subr.bf16.mxu1 %v1608_v13  ;;  %v1641_v35 = vld [vmem:[#allocation2 + $0x1f0] ss:$8 sps:$4 sm:$0xff]   ;;  %v1642_v36 = vld [vmem:[#allocation2 + $0xe4] ss:$8 sps:$4 sm:$0xff]   ;;  %v1646_v38 = vld [vmem:[#allocation2 + $0xe0] ss:$8 sps:$4 sm:$0xff]  }
  0x1a   :  { %v1644_v37 = vld [vmem:[#allocation2 + $0x1e4] ss:$8 sps:$4 sm:$0xff]   ;;  %v1647_v39 = vld [vmem:[#allocation2 + $0x1e0] ss:$8 sps:$4 sm:$0xff]   ;;  %v1648_v40 = vld [vmem:[#allocation2 + $0xd4] ss:$8 sps:$4 sm:$0xff]  }
  0x1b   :  { %870 = vmatpush1.bf16.msra.mxu0 %v1610_v14  ;;  %v1650_v41 = vld [vmem:[#allocation2 + $0x1d4] ss:$8 sps:$4 sm:$0xff]   ;;  %v1652_v42 = vld [vmem:[#allocation2 + $0xd0] ss:$8 sps:$4 sm:$0xff]   ;;  %v1654_v44 = vld [vmem:[#allocation2 + $0xc4] ss:$8 sps:$4 sm:$0xff]  }
  0x1c   :  { %913 = vmatpush1.bf16.msra.mxu1 %v1611_v15  ;;  %871 = vmatprep.subr.bf16.mxu0 %v1612_v16  ;;  %v1653_v43 = vld [vmem:[#allocation2 + $0x1d0] ss:$8 sps:$4 sm:$0xff]   ;;  %v1656_v45 = vld [vmem:[#allocation2 + $0x1c4] ss:$8 sps:$4 sm:$0xff]   ;;  %v1658_v46 = vld [vmem:[#allocation2 + $0xc0] ss:$8 sps:$4 sm:$0xff]  }
  0x1d   :  { %914 = vmatprep.subr.bf16.mxu1 %v1614_v17  ;;  %v1659_v47 = vld [vmem:[#allocation2 + $0x1c0] ss:$8 sps:$4 sm:$0xff]   ;;  %v1660_v52 = vld [vmem:[#allocation2 + $0xb4] ss:$8 sps:$4 sm:$0xff]   ;;  %v1664_v56 = vld [vmem:[#allocation2 + $0xb0] ss:$8 sps:$4 sm:$0xff]  }
  0x1e   :  { %v35_v48 = vld [vmem:[%s2044_s0] sm:$0xff]  ;;  %v36_v50 = vld [vmem:[%s2044_s0 + $0x8] sm:$0xff]  ;;  %v1662_v54 = vld [vmem:[#allocation2 + $0x1b4] ss:$8 sps:$4 sm:$0xff]   ;;  %s1837_s23 = smov 64   ;;  %s1838_s24 = smov 96  }
  0x1f   :  { %872 = vmatpush1.bf16.msra.mxu0 %v1616_v18  ;;  %v39_v49 = vld [vmem:[%s2044_s0 + $0x20] sm:$0xff]  ;;  %v40_v51 = vld [vmem:[%s2044_s0 + $0x28] sm:$0xff]  ;;  %v1665_v57 = vld [vmem:[#allocation2 + $0x1b0] ss:$8 sps:$4 sm:$0xff]   ;;  %s1840_s1 = smov 112   ;;  %vm1307_vm0 = vcmask 64512  }
  0x20   :  { %915 = vmatpush1.bf16.msra.mxu1 %v1617_v19  ;;  %873 = vmatprep.subr.bf16.mxu0 %v1618_v20  ;;  %v1406_v53 = vcombine.high %v35_v48, %v39_v49  ;;  %v1408_v55 = vcombine.high %v36_v50, %v40_v51  ;;  %v1666_v58 = vld [vmem:[#allocation2 + $0xa4] ss:$8 sps:$4 sm:$0xff]   ;;  %v1670_v60 = vld [vmem:[#allocation2 + $0xa0] ss:$8 sps:$4 sm:$0xff]   ;;  %v1672_v62 = vld [vmem:[#allocation2 + $0x94] ss:$8 sps:$4 sm:$0xff]   ;;  %v1405_v8 = vcombine.low %v35_v48, %v39_v49 }
  0x21   :  { %916 = vmatprep.subr.bf16.mxu1 %v1620_v21  ;;  %v1668_v59 = vld [vmem:[#allocation2 + $0x1a4] ss:$8 sps:$4 sm:$0xff]   ;;  %v1671_v61 = vld [vmem:[#allocation2 + $0x1a0] ss:$8 sps:$4 sm:$0xff]   ;;  %v1674_v63 = vld [vmem:[#allocation2 + $0x194] ss:$8 sps:$4 sm:$0xff]   ;;  %v1407_v9 = vcombine.low %v36_v50, %v40_v51 }
  0x22   :  { %895 = vmatprep.mubr.bf16.mxu0 %v1406_v53  ;;  %938 = vmatprep.mubr.bf16.mxu1 %v1408_v55  ;;  %v1676_v0 = vld [vmem:[#allocation2 + $0x90] ss:$8 sps:$4 sm:$0xff]   ;;  %v1678_v2 = vld [vmem:[#allocation2 + $0x84] ss:$8 sps:$4 sm:$0xff]   ;;  %v1682_v4 = vld [vmem:[#allocation2 + $0x80] ss:$8 sps:$4 sm:$0xff]  }
  0x23   :  { %874 = vmatpush1.bf16.msra.mxu0 %v1622_v22  ;;  %v1677_v1 = vld [vmem:[#allocation2 + $0x190] ss:$8 sps:$4 sm:$0xff]   ;;  %v1680_v3 = vld [vmem:[#allocation2 + $0x184] ss:$8 sps:$4 sm:$0xff]   ;;  %v1683_v5 = vld [vmem:[#allocation2 + $0x180] ss:$8 sps:$4 sm:$0xff]  }
  0x24   :  { %917 = vmatpush1.bf16.msra.mxu1 %v1623_v23  ;;  %875 = vmatprep.subr.bf16.mxu0 %v1624_v24  ;;  %v1686_v6 = vld [vmem:[#allocation2 + $0x274] ss:$8 sps:$4 sm:$0xff]   ;;  %v1684_v10 = vld [vmem:[#allocation2 + $0x270] ss:$8 sps:$4 sm:$0xff]   ;;  %v1692_v12 = vld [vmem:[#allocation2 + $0x264] ss:$8 sps:$4 sm:$0xff]  }
  0x25   :  { %918 = vmatprep.subr.bf16.mxu1 %v1626_v25  ;;  %v1689_v7 = vld [vmem:[#allocation2 + $0x374] ss:$8 sps:$4 sm:$0xff]   ;;  %v1687_v11 = vld [vmem:[#allocation2 + $0x370] ss:$8 sps:$4 sm:$0xff]   ;;  %v1695_v13 = vld [vmem:[#allocation2 + $0x364] ss:$8 sps:$4 sm:$0xff]  }
  0x26   :  { %v1690_v14 = vld [vmem:[#allocation2 + $0x260] ss:$8 sps:$4 sm:$0xff]   ;;  %v1698_v16 = vld [vmem:[#allocation2 + $0x254] ss:$8 sps:$4 sm:$0xff]   ;;  %v1696_v18 = vld [vmem:[#allocation2 + $0x250] ss:$8 sps:$4 sm:$0xff]  }
  0x27   :  { %876 = vmatpush1.bf16.msra.mxu0 %v1628_v26  ;;  %v1693_v15 = vld [vmem:[#allocation2 + $0x360] ss:$8 sps:$4 sm:$0xff]   ;;  %v1701_v17 = vld [vmem:[#allocation2 + $0x354] ss:$8 sps:$4 sm:$0xff]   ;;  %v1699_v19 = vld [vmem:[#allocation2 + $0x350] ss:$8 sps:$4 sm:$0xff]  }
  0x28   :  { %919 = vmatpush1.bf16.msra.mxu1 %v1629_v27  ;;  %877 = vmatprep.subr.bf16.mxu0 %v1630_v28  ;;  %v1704_v20 = vld [vmem:[#allocation2 + $0x244] ss:$8 sps:$4 sm:$0xff]   ;;  %v1702_v22 = vld [vmem:[#allocation2 + $0x240] ss:$8 sps:$4 sm:$0xff]   ;;  %v1710_v24 = vld [vmem:[#allocation2 + $0x234] ss:$8 sps:$4 sm:$0xff]  }
  0x29   :  { %920 = vmatprep.subr.bf16.mxu1 %v1632_v29  ;;  %v1707_v21 = vld [vmem:[#allocation2 + $0x344] ss:$8 sps:$4 sm:$0xff]   ;;  %v1705_v23 = vld [vmem:[#allocation2 + $0x340] ss:$8 sps:$4 sm:$0xff]   ;;  %v1713_v25 = vld [vmem:[#allocation2 + $0x334] ss:$8 sps:$4 sm:$0xff]  }
  0x2a   :  { %v1708_v26 = vld [vmem:[#allocation2 + $0x230] ss:$8 sps:$4 sm:$0xff]   ;;  %v1716_v28 = vld [vmem:[#allocation2 + $0x224] ss:$8 sps:$4 sm:$0xff]   ;;  %v1741_v53 = vld [vmem:[#allocation2 + $0x3e0] ss:$8 sps:$4 sm:$0xff]  }
  0x2b   :  { %878 = vmatpush1.bf16.msra.mxu0 %v1634_v30  ;;  %v1711_v27 = vld [vmem:[#allocation2 + $0x330] ss:$8 sps:$4 sm:$0xff]   ;;  %v1719_v29 = vld [vmem:[#allocation2 + $0x324] ss:$8 sps:$4 sm:$0xff]   ;;  %v1714_v30 = vld [vmem:[#allocation2 + $0x220] ss:$8 sps:$4 sm:$0xff]  }
  0x2c   :  { %921 = vmatpush1.bf16.msra.mxu1 %v1635_v31  ;;  %879 = vmatprep.subr.bf16.mxu0 %v1636_v32  ;;  %v1717_v31 = vld [vmem:[#allocation2 + $0x320] ss:$8 sps:$4 sm:$0xff]   ;;  %v1722_v32 = vld [vmem:[#allocation2 + $0x214] ss:$8 sps:$4 sm:$0xff]   ;;  %v1732_v48 = vld [vmem:[#allocation2 + $0x2f0] ss:$8 sps:$4 sm:$0xff]  }
  0x2d   :  { %922 = vmatprep.subr.bf16.mxu1 %v1638_v33  ;;  %v1725_v33 = vld [vmem:[#allocation2 + $0x314] ss:$8 sps:$4 sm:$0xff]   ;;  %v1735_v49 = vld [vmem:[#allocation2 + $0x3f0] ss:$8 sps:$4 sm:$0xff]   ;;  %v1740_v50 = vld [vmem:[#allocation2 + $0x2e4] ss:$8 sps:$4 sm:$0xff]  }
  0x2e   :  { %v1743_v51 = vld [vmem:[#allocation2 + $0x3e4] ss:$8 sps:$4 sm:$0xff]   ;;  %v1749_v55 = vld [vmem:[#allocation2 + $0x3d4] ss:$8 sps:$4 sm:$0xff]   ;;  %vm1310_vm1 = vcmask 130048   ;;  %vm1313_vm2 = vcmask 195584  }
  0x2f   :  { %880 = vmatpush2.bf16.msra.mxu0 %v1640_v34  ;;  %v1720_v34 = vld [vmem:[#allocation2 + $0x210] ss:$8 sps:$4 sm:$0xff]   ;;  %s1841_s25 = smov 16   ;;  %vm1217_vm3 = vcmask 97344   ;;  %vm1238_vm4 = vcmask 31744   ;;  %vm1390_vm5 = vcmask 97280  }
  0x30   :  { %923 = vmatpush2.bf16.msra.mxu1 %v1641_v35  ;;  %881 = vmatprep.subr.bf16.mxu0 %v1642_v36  ;;  %v1723_v35 = vld [vmem:[#allocation2 + $0x310] ss:$8 sps:$4 sm:$0xff]   ;;  %vm1395_vm6 = vcmask 392192  }
  0x31   :  { %924 = vmatprep.subr.bf16.mxu1 %v1644_v37  ;;  %v1891_v36 = vld [vmem:[%s2044_s0 + $0x10] sm:$0xff]  ;;  %v1728_v37 = vld [vmem:[#allocation2 + $0x204] ss:$8 sps:$4 sm:$0xff]  }
  0x33   :  { %882 = vmatpush2.bf16.msra.mxu0 %v1646_v38  ;;  %v1896_v38 = vld [vmem:[%s2044_s0 + $0x30] sm:$0xff] }
  0x34   :  { %925 = vmatpush2.bf16.msra.mxu1 %v1647_v39  ;;  %883 = vmatprep.subr.bf16.mxu0 %v1648_v40  ;;  %v1901_v39 = vld [vmem:[%s2044_s0 + $0x18] sm:$0xff] }
  0x35   :  { %926 = vmatprep.subr.bf16.mxu1 %v1650_v41  ;;  %v1906_v40 = vld [vmem:[%s2044_s0 + $0x38] sm:$0xff]  ;;  %v1731_v41 = vld [vmem:[#allocation2 + $0x304] ss:$8 sps:$4 sm:$0xff]  }
  0x37   :  { %884 = vmatpush2.bf16.msra.mxu0 %v1652_v42  ;;  %v1410_v42 = vcombine.high %v1891_v36, %v1896_v38 }
  0x38   :  { %927 = vmatpush2.bf16.msra.mxu1 %v1653_v43  ;;  %885 = vmatprep.subr.bf16.mxu0 %v1654_v44  ;;  %v1412_v43 = vcombine.high %v1901_v39, %v1906_v40  ;;  %v1726_v44 = vld [vmem:[#allocation2 + $0x200] ss:$8 sps:$4 sm:$0xff]  }
  0x39   :  { %928 = vmatprep.subr.bf16.mxu1 %v1656_v45  ;;  %v1729_v45 = vld [vmem:[#allocation2 + $0x300] ss:$8 sps:$4 sm:$0xff]  }
  0x3b   :  { %886 = vmatpush2.bf16.msra.mxu0 %v1658_v46  ;;  %v1734_v46 = vld [vmem:[#allocation2 + $0x2f4] ss:$8 sps:$4 sm:$0xff]  }
  0x3c   :  { %929 = vmatpush2.bf16.msra.mxu1 %v1659_v47  ;;  %887 = vmatprep.subr.bf16.mxu0 %v1660_v52  ;;  %v1737_v47 = vld [vmem:[#allocation2 + $0x3f4] ss:$8 sps:$4 sm:$0xff]   ;;  %v1738_v52 = vld [vmem:[#allocation2 + $0x2e0] ss:$8 sps:$4 sm:$0xff]  }
  0x3d   :  { %930 = vmatprep.subr.bf16.mxu1 %v1662_v54  ;;  %v1746_v54 = vld [vmem:[#allocation2 + $0x2d4] ss:$8 sps:$4 sm:$0xff]  }
  0x3f   :  { %888 = vmatpush2.bf16.msra.mxu0 %v1664_v56  ;;  %v1744_v56 = vld [vmem:[#allocation2 + $0x2d0] ss:$8 sps:$4 sm:$0xff]  }
  0x40   :  { %931 = vmatpush2.bf16.msra.mxu1 %v1665_v57  ;;  %889 = vmatprep.subr.bf16.mxu0 %v1666_v58  ;;  %v1747_v57 = vld [vmem:[#allocation2 + $0x3d0] ss:$8 sps:$4 sm:$0xff]   ;;  %v1752_v58 = vld [vmem:[#allocation2 + $0x2c4] ss:$8 sps:$4 sm:$0xff]  }
  0x41   :  { %932 = vmatprep.subr.bf16.mxu1 %v1668_v59  ;;  %v1755_v59 = vld [vmem:[#allocation2 + $0x3c4] ss:$8 sps:$4 sm:$0xff]  }
  0x43   :  { %890 = vmatpush2.bf16.msra.mxu0 %v1670_v60  ;;  %v1750_v60 = vld [vmem:[#allocation2 + $0x2c0] ss:$8 sps:$4 sm:$0xff]  }
  0x44   :  { %933 = vmatpush2.bf16.msra.mxu1 %v1671_v61  ;;  %891 = vmatprep.subr.bf16.mxu0 %v1672_v62  ;;  %v1753_v61 = vld [vmem:[#allocation2 + $0x3c0] ss:$8 sps:$4 sm:$0xff]   ;;  %v1758_v62 = vld [vmem:[#allocation2 + $0x2b4] ss:$8 sps:$4 sm:$0xff]  }
  0x45   :  { %934 = vmatprep.subr.bf16.mxu1 %v1674_v63  ;;  %v1761_v63 = vld [vmem:[#allocation2 + $0x3b4] ss:$8 sps:$4 sm:$0xff]  }
  0x47   :  { %892 = vmatpush2.bf16.msra.mxu0 %v1676_v0  ;;  %v1756_v0 = vld [vmem:[#allocation2 + $0x2b0] ss:$8 sps:$4 sm:$0xff]  }
  0x48   :  { %935 = vmatpush2.bf16.msra.mxu1 %v1677_v1  ;;  %893 = vmatprep.subr.bf16.mxu0 %v1678_v2  ;;  %v1759_v1 = vld [vmem:[#allocation2 + $0x3b0] ss:$8 sps:$4 sm:$0xff]   ;;  %v1764_v2 = vld [vmem:[#allocation2 + $0x2a4] ss:$8 sps:$4 sm:$0xff]  }
  0x49   :  { %936 = vmatprep.subr.bf16.mxu1 %v1680_v3  ;;  %v1767_v3 = vld [vmem:[#allocation2 + $0x3a4] ss:$8 sps:$4 sm:$0xff]  }
  0x4b   :  { %894 = vmatpush2.bf16.msra.mxu0 %v1682_v4  ;;  %v1762_v4 = vld [vmem:[#allocation2 + $0x2a0] ss:$8 sps:$4 sm:$0xff]  }
  0x4c   :  { %937 = vmatpush2.bf16.msra.mxu1 %v1683_v5  ;;  %949 = vmatprep.subr.bf16.mxu0 %v1686_v6  ;;  %v1765_v5 = vld [vmem:[#allocation2 + $0x3a0] ss:$8 sps:$4 sm:$0xff]   ;;  %v1770_v6 = vld [vmem:[#allocation2 + $0x294] ss:$8 sps:$4 sm:$0xff]  }
  0x4d   :  { %992 = vmatprep.subr.bf16.mxu1 %v1689_v7  ;;  %v1773_v7 = vld [vmem:[#allocation2 + $0x394] ss:$8 sps:$4 sm:$0xff]  }
  0x4e   :  { %896 = vmatmul.mubr.bf16.vlgmr.msra.gmra.mxu0 %v1405_v8  ;;  %v1768_v8 = vld [vmem:[#allocation2 + $0x290] ss:$8 sps:$4 sm:$0xff]  }
  0x4f   :  { %939 = vmatmul.mubr.bf16.vlgmr.msra.gmra.mxu1 %v1407_v9  ;;  %950 = vmatpush1.bf16.msra.mxu0 %v1684_v10  ;;  %v1771_v9 = vld [vmem:[#allocation2 + $0x390] ss:$8 sps:$4 sm:$0xff]   ;;  %v1776_v10 = vld [vmem:[#allocation2 + $0x284] ss:$8 sps:$4 sm:$0xff]  }
  0x50   :  { %993 = vmatpush1.bf16.msra.mxu1 %v1687_v11  ;;  %951 = vmatprep.subr.bf16.mxu0 %v1692_v12  ;;  %v1779_v11 = vld [vmem:[#allocation2 + $0x384] ss:$8 sps:$4 sm:$0xff]   ;;  %v1774_v12 = vld [vmem:[#allocation2 + $0x280] ss:$8 sps:$4 sm:$0xff]  }
  0x51   :  { %994 = vmatprep.subr.bf16.mxu1 %v1695_v13  ;;  %981 = vmatprep.mubr.bf16.mxu0 %v1410_v42  ;;  %v1777_v13 = vld [vmem:[#allocation2 + $0x380] ss:$8 sps:$4 sm:$0xff]  }
  0x52   :  { %1024 = vmatprep.mubr.bf16.mxu1 %v1412_v43 }
  0x53   :  { %952 = vmatpush1.bf16.msra.mxu0 %v1690_v14  ;;  %v1409_v14 = vcombine.low %v1891_v36, %v1896_v38 }
  0x54   :  { %995 = vmatpush1.bf16.msra.mxu1 %v1693_v15  ;;  %953 = vmatprep.subr.bf16.mxu0 %v1698_v16  ;;  %v1411_v15 = vcombine.low %v1901_v39, %v1906_v40  ;;  %v1780_v16 = vld [vmem:[%s2047_s3 + $0x78] sm:$0xff]  }
  0x55   :  { %996 = vmatprep.subr.bf16.mxu1 %v1701_v17  ;;  %v1781_v17 = vld [vmem:[%s2047_s3 + $0x38] sm:$0xff]  }
  0x57   :  { %954 = vmatpush1.bf16.msra.mxu0 %v1696_v18  ;;  %v1782_v18 = vld [vmem:[%s2047_s3 + $0x70] sm:$0xff]  }
  0x58   :  { %997 = vmatpush1.bf16.msra.mxu1 %v1699_v19  ;;  %955 = vmatprep.subr.bf16.mxu0 %v1704_v20  ;;  %v1783_v19 = vld [vmem:[%s2047_s3 + $0x30] sm:$0xff]   ;;  %v1784_v20 = vld [vmem:[%s2047_s3 + $0x68] sm:$0xff]  }
  0x59   :  { %998 = vmatprep.subr.bf16.mxu1 %v1707_v21  ;;  %v1785_v21 = vld [vmem:[%s2047_s3 + $0x28] sm:$0xff]  }
  0x5b   :  { %956 = vmatpush1.bf16.msra.mxu0 %v1702_v22  ;;  %v1786_v22 = vld [vmem:[%s2047_s3 + $0x60] sm:$0xff]  }
  0x5c   :  { %999 = vmatpush1.bf16.msra.mxu1 %v1705_v23  ;;  %957 = vmatprep.subr.bf16.mxu0 %v1710_v24  ;;  %v1787_v23 = vld [vmem:[%s2047_s3 + $0x20] sm:$0xff]   ;;  %v1788_v24 = vld [vmem:[%s2047_s3 + $0x58] sm:$0xff]  }
  0x5d   :  { %1000 = vmatprep.subr.bf16.mxu1 %v1713_v25  ;;  %v1789_v25 = vld [vmem:[%s2047_s3 + $0x18] sm:$0xff]  }
  0x5f   :  { %958 = vmatpush1.bf16.msra.mxu0 %v1708_v26  ;;  %v1790_v26 = vld [vmem:[%s2047_s3 + $0x50] sm:$0xff]  }
  0x60   :  { %1001 = vmatpush1.bf16.msra.mxu1 %v1711_v27  ;;  %959 = vmatprep.subr.bf16.mxu0 %v1716_v28  ;;  %v1791_v27 = vld [vmem:[%s2047_s3 + $0x10] sm:$0xff]   ;;  %v1792_v28 = vld [vmem:[%s2047_s3 + $0x48] sm:$0xff]  }
  0x61   :  { %1002 = vmatprep.subr.bf16.mxu1 %v1719_v29  ;;  %v1793_v29 = vld [vmem:[%s2047_s3 + $0x8] sm:$0xff]  }
  0x63   :  { %960 = vmatpush1.bf16.msra.mxu0 %v1714_v30  ;;  %v1794_v30 = vld [vmem:[%s2047_s3 + $0x40] sm:$0xff]  }
  0x64   :  { %1003 = vmatpush1.bf16.msra.mxu1 %v1717_v31  ;;  %961 = vmatprep.subr.bf16.mxu0 %v1722_v32  ;;  %v1795_v31 = vld [vmem:[%s2047_s3] sm:$0xff]   ;;  %v173_v32 = vlaneseq }
  0x65   :  { %1004 = vmatprep.subr.bf16.mxu1 %v1725_v33 }
  0x66   :  { %v174_v33 = vshrl.u32 %v173_v32, 7 }
  0x67   :  { %962 = vmatpush1.bf16.msra.mxu0 %v1720_v34 }
  0x68   :  { %1005 = vmatpush1.bf16.msra.mxu1 %v1723_v35  ;;  %963 = vmatprep.subr.bf16.mxu0 %v1728_v37  ;;  %v179_v36 = vsub.s32 1, %v174_v33  ;;  %v171_v37 = vld [vmem:[%s2046_s2] sm:$0x3]  ;;  %v175_v38 = vsub.s32 0, %v174_v33 }
  0x69   :  { %1006 = vmatprep.subr.bf16.mxu1 %v1731_v41 }
  0x6a   :  { %v180_v41 = vrot.slane %v171_v37, %v179_v36  ;;  %v176_v42 = vrot.slane %v171_v37, %v175_v38 }
  0x6b   :  { %964 = vmatpush1.bf16.msra.mxu0 %v1726_v44 }
  0x6c   :  { %1007 = vmatpush1.bf16.msra.mxu1 %v1729_v45  ;;  %965 = vmatprep.subr.bf16.mxu0 %v1734_v46 }
  0x6d   :  { %1008 = vmatprep.subr.bf16.mxu1 %v1737_v47 }
  0x6f   :  { %966 = vmatpush2.bf16.msra.mxu0 %v1732_v48 }
  0x70   :  { %1009 = vmatpush2.bf16.msra.mxu1 %v1735_v49  ;;  %967 = vmatprep.subr.bf16.mxu0 %v1740_v50 }
  0x71   :  { %1010 = vmatprep.subr.bf16.mxu1 %v1743_v51 }
  0x73   :  { %968 = vmatpush2.bf16.msra.mxu0 %v1738_v52 }
  0x74   :  { %1011 = vmatpush2.bf16.msra.mxu1 %v1741_v53  ;;  %969 = vmatprep.subr.bf16.mxu0 %v1746_v54 }
  0x75   :  { %1012 = vmatprep.subr.bf16.mxu1 %v1749_v55 }
  0x77   :  { %970 = vmatpush2.bf16.msra.mxu0 %v1744_v56 }
  0x78   :  { %1013 = vmatpush2.bf16.msra.mxu1 %v1747_v57  ;;  %971 = vmatprep.subr.bf16.mxu0 %v1752_v58 }
  0x79   :  { %1014 = vmatprep.subr.bf16.mxu1 %v1755_v59 }
  0x7b   :  { %972 = vmatpush2.bf16.msra.mxu0 %v1750_v60 }
  0x7c   :  { %1015 = vmatpush2.bf16.msra.mxu1 %v1753_v61  ;;  %973 = vmatprep.subr.bf16.mxu0 %v1758_v62 }
  0x7d   :  { %1016 = vmatprep.subr.bf16.mxu1 %v1761_v63 }
  0x7f   :  { %974 = vmatpush2.bf16.msra.mxu0 %v1756_v0 }
  0x80   :  { %1017 = vmatpush2.bf16.msra.mxu1 %v1759_v1  ;;  %975 = vmatprep.subr.bf16.mxu0 %v1764_v2 }
  0x81   :  { %1018 = vmatprep.subr.bf16.mxu1 %v1767_v3 }
  0x83   :  { %976 = vmatpush2.bf16.msra.mxu0 %v1762_v4 }
  0x84   :  { %1019 = vmatpush2.bf16.msra.mxu1 %v1765_v5  ;;  %977 = vmatprep.subr.bf16.mxu0 %v1770_v6 }
  0x85   :  { %1020 = vmatprep.subr.bf16.mxu1 %v1773_v7 }
  0x87   :  { %978 = vmatpush2.bf16.msra.mxu0 %v1768_v8 }
  0x88   :  { %1021 = vmatpush2.bf16.msra.mxu1 %v1771_v9  ;;  %979 = vmatprep.subr.bf16.mxu0 %v1776_v10 }
  0x89   :  { %1022 = vmatprep.subr.bf16.mxu1 %v1779_v11 }
  0x8b   :  { %980 = vmatpush2.bf16.msra.mxu0 %v1774_v12 }
  0x8c   :  { %1023 = vmatpush2.bf16.msra.mxu1 %v1777_v13  ;;  %1558 = vmatprep.subr.bf16.mxu0 %v1780_v16 }
  0x8e   :  { %982 = vmatmul.mubr.bf16.vlgmr.msra.gmra.mxu0 %v1409_v14  ;;  %v1541_v14 = vld [vmem:[%s2048_s4] ss:$0 sm:$0xff]  ;;  %s1839_s4 = smov 120  }
  0x8f   :  { %1025 = vmatmul.mubr.bf16.vlgmr.msra.gmra.mxu1 %v1411_v15  ;;  %1559 = vmatpush3.bf16.msra.mxu0 %v1781_v17 }
  0x90   :  { %1560 = vmatprep.subr.bf16.mxu0 %v1782_v18 }
  0x93   :  { %1561 = vmatpush3.bf16.msra.mxu0 %v1783_v19 }
  0x94   :  { %1562 = vmatprep.subr.bf16.mxu0 %v1784_v20 }
  0x97   :  { %1563 = vmatpush3.bf16.msra.mxu0 %v1785_v21 }
  0x98   :  { %1564 = vmatprep.subr.bf16.mxu0 %v1786_v22 }
  0x9b   :  { %1565 = vmatpush3.bf16.msra.mxu0 %v1787_v23 }
  0x9c   :  { %1566 = vmatprep.subr.bf16.mxu0 %v1788_v24 }
  0x9f   :  { %1567 = vmatpush3.bf16.msra.mxu0 %v1789_v25 }
  0xa0   :  { %1568 = vmatprep.subr.bf16.mxu0 %v1790_v26 }
  0xa3   :  { %1569 = vmatpush3.bf16.msra.mxu0 %v1791_v27 }
  0xa4   :  { %1570 = vmatprep.subr.bf16.mxu0 %v1792_v28 }
  0xa7   :  { %1571 = vmatpush3.bf16.msra.mxu0 %v1793_v29 }
  0xa8   :  { %1572 = vmatprep.subr.bf16.mxu0 %v1794_v30 }
  0xab   :  { %1573 = vmatpush3.bf16.msra.mxu0 %v1795_v31 }
 0x10e   :  { %v897_v34 = vpop.f32.mrf.mxu0 }
 0x10f   :  { %v940_v35 = vpop.f32.mrf.mxu1  ;;  %v898_v46 = vadd.f32 %v897_v34, %v176_v42 }
 0x110   :  { %v899_v39 = vpop.f32.mrf.mxu0 }
 0x111   :  { %v942_v40 = vpop.f32.mrf.mxu1  ;;  %v900_v45 = vadd.f32 %v899_v39, %v180_v41  ;;  %v941_v54 = vadd.f32 %v940_v35, %v898_v46 }
 0x112   :  { %v901_v43 = vpop.f32.mrf.mxu0 }
 0x113   :  { %v944_v44 = vpop.f32.mrf.mxu1  ;;  %v902_v49 = vadd.f32 %v901_v43, %v176_v42  ;;  %v943_v52 = vadd.f32 %v942_v40, %v900_v45 }
 0x114   :  { %v903_v47 = vpop.f32.mrf.mxu0 }
 0x115   :  { %v946_v48 = vpop.f32.mrf.mxu1  ;;  %v904_v53 = vadd.f32 %v903_v47, %v180_v41  ;;  %v945_v57 = vadd.f32 %v944_v44, %v902_v49 }
 0x117   :  { %v947_v62 = vadd.f32 %v946_v48, %v904_v53 }
 0x14e   :  { %v983_v50 = vpop.f32.mrf.mxu0 }
 0x14f   :  { %v1026_v51 = vpop.f32.mrf.mxu1  ;;  %v984_v59 = vadd.f32 %v983_v50, %v941_v54 }
 0x150   :  { %v985_v55 = vpop.f32.mrf.mxu0 }
 0x151   :  { %v1028_v56 = vpop.f32.mrf.mxu1  ;;  %v986_v58 = vadd.f32 %v985_v55, %v943_v52  ;;  %v1027_v4 = vadd.f32 %v1026_v51, %v984_v59 }
 0x152   :  { %v987_v60 = vpop.f32.mrf.mxu0 }
 0x153   :  { %v1030_v61 = vpop.f32.mrf.mxu1  ;;  %v988_v63 = vadd.f32 %v987_v60, %v945_v57  ;;  %v1029_v1 = vadd.f32 %v1028_v56, %v986_v58  ;;  %v1035_v10 = vmax.f32 %v1027_v4, 0.0 }
 0x154   :  { %v989_v0 = vpop.f32.mrf.mxu0 }
 0x155   :  { %v1031_v2 = vadd.f32 %v1030_v61, %v988_v63  ;;  %v990_v3 = vadd.f32 %v989_v0, %v947_v62  ;;  %v1032_v5 = vpop.f32.mrf.mxu1  ;;  %v1036_v8 = vmax.f32 %v1029_v1, 0.0 }
 0x157   :  { %v1033_v6 = vadd.f32 %v1032_v5, %v990_v3  ;;  %v1037_v7 = vmax.f32 %v1031_v2, 0.0 }
 0x159   :  { %v1038_v9 = vmax.f32 %v1033_v6, 0.0  ;;  %v1039_v12 = vpack.c.bf16 %v1037_v7, %v1035_v10 }
 0x15b   :  { %v1040_v11 = vpack.c.bf16 %v1038_v9, %v1036_v8 }
 0x15d   :  { %1208 = vmatprep.mubr.bf16.mxu0 %v1040_v11 }
 0x15e   :  { %1209 = vmatmul.mubr.bf16.vlgmr.msra.gmra.mxu0 %v1039_v12 }
 0x21e   :  { %v1574_v13 = vpop.f32.mrf.mxu0 }
 0x220   :  { %v1575_v15 = vpop.f32.mrf.mxu0 }
 0x221   :  { %v1576_v16 = vadd.f32 %v1575_v15, %v1574_v13 }
 0x222   :  { %v1577_v17 = vpop.f32.mrf.mxu0 }
 0x223   :  { %v1970_v18 = vadd.f32 %v1576_v16, %v1541_v14 }
 0x224   :  { %v1578_v19 = vpop.f32.mrf.mxu0 }
 0x225   :  { %v1579_v20 = vadd.f32 %v1578_v19, %v1577_v17  ;;  %1259 = vrot.lane.b32.xlu1 %v1970_v18, %s1837_s23  ;;  %1251 = vrot.lane.b32.xlu0 %v1970_v18, %s1838_s24  ;;  %v1218_v58 = vsel %vm1217_vm3, %v1970_v18, -inf }
 0x227   :  { %v1974_v21 = vadd.f32 %v1579_v20, %v1541_v14 }
 0x229   :  { %1261 = vrot.lane.b32.xlu1 %v1974_v21, %s1837_s23  ;;  %1253 = vrot.lane.b32.xlu0 %v1974_v21, %s1838_s24  ;;  %v1221_v59 = vsel %vm1217_vm3, %v1974_v21, -inf }
 0x297   :  { %v1260_v22 = vpop.permute.xlu1 %1259  ;;  %v1252_v23 = vpop.permute.xlu0 %1251 }
 0x298   :  { %v1257_v24 = vmul.f32 %v1252_v23, %v1970_v18 }
 0x29a   :  { %v1265_v25 = vadd.f32 %v1260_v22, %v1257_v24 }
 0x29b   :  { %v1254_v26 = vpop.permute.xlu0 %1253  ;;  %v1262_v28 = vpop.permute.xlu1 %1261 }
 0x29c   :  { %v1258_v27 = vmul.f32 %v1254_v26, %v1974_v21  ;;  %1269 = vrot.lane.b32.xlu0 %v1265_v25, %s1839_s4 }
 0x29e   :  { %v1266_v29 = vadd.f32 %v1262_v28, %v1258_v27 }
 0x2a0   :  { %1271 = vrot.lane.b32.xlu1 %v1266_v29, %s1839_s4 }
 0x30e   :  { %v1270_v30 = vpop.permute.xlu0 %1269 }
 0x30f   :  { %v1275_v31 = vmax.f32 %v1265_v25, %v1270_v30 }
 0x311   :  { %1279 = vrot.lane.b32.xlu0 %v1275_v31, %s1840_s1 }
 0x312   :  { %v1272_v32 = vpop.permute.xlu1 %1271 }
 0x313   :  { %v1276_v33 = vmax.f32 %v1266_v29, %v1272_v32 }
 0x315   :  { %1281 = vrot.lane.b32.xlu1 %v1276_v33, %s1840_s1 }
 0x383   :  { %v1280_v34 = vpop.permute.xlu0 %1279 }
 0x384   :  { %v1285_v35 = vmax.f32 %v1275_v31, %v1280_v34 }
 0x386   :  { %1289 = vrot.lane.b32.xlu0 %v1285_v35, %s1840_s1 }
 0x387   :  { %v1282_v36 = vpop.permute.xlu1 %1281 }
 0x388   :  { %v1286_v37 = vmax.f32 %v1276_v33, %v1282_v36 }
 0x38a   :  { %1291 = vrot.lane.b32.xlu1 %v1286_v37, %s1840_s1  ;;  %1295 = vrot.lane.b32.xlu0 %v1285_v35, %s1839_s4 }
 0x38e   :  { %1297 = vrot.lane.b32.xlu1 %v1286_v37, %s1839_s4  ;;  %1301 = vrot.lane.b32.xlu0 %v1285_v35, %s1836_s22 }
 0x392   :  { %1303 = vrot.lane.b32.xlu1 %v1286_v37, %s1836_s22 }
 0x3f8   :  { %v1290_v38 = vpop.permute.xlu0 %1289 }
 0x3fc   :  { %v1292_v39 = vpop.permute.xlu1 %1291  ;;  %v1296_v40 = vpop.permute.xlu0 %1295 }
 0x3fd   :  { %v1308_v41 = vsel %vm1307_vm0, %v1290_v38, %v1296_v40 }
 0x3fe   :  { %v1311_v44 = vsel %vm1310_vm1, %v1308_v41, %v1285_v35 }
 0x400   :  { %v1298_v42 = vpop.permute.xlu1 %1297  ;;  %v1302_v43 = vpop.permute.xlu0 %1301 }
 0x401   :  { %v1309_v45 = vsel %vm1307_vm0, %v1292_v39, %v1298_v42  ;;  %v1314_v46 = vsel %vm1313_vm2, %v1311_v44, %v1302_v43 }
 0x402   :  { %1318 = vrot.lane.b32.xlu0 %v1314_v46, %s1841_s25  ;;  %v1312_v48 = vsel %vm1310_vm1, %v1309_v45, %v1286_v37 }
 0x404   :  { %v1304_v47 = vpop.permute.xlu1 %1303 }
 0x405   :  { %v1315_v49 = vsel %vm1313_vm2, %v1312_v48, %v1304_v47 }
 0x406   :  { %1320 = vrot.lane.b32.xlu1 %v1315_v49, %s1841_s25 }
 0x474   :  { %v1319_v50 = vpop.permute.xlu0 %1318 }
 0x475   :  { %v1324_v51 = vsub.f32 %v1265_v25, %v1319_v50 }
 0x477   :  { %v1326_v52 = vmul.f32 1.442695, %v1324_v51 }
 0x478   :  { %v1321_v53 = vpop.permute.xlu1 %1320 }
 0x479   :  { %1796 = vpow2.f32 %v1326_v52  ;;  %v1325_v54 = vsub.f32 %v1266_v29, %v1321_v53 }
 0x47b   :  { %v1328_v55 = vmul.f32 1.442695, %v1325_v54 }
 0x47d   :  { %1798 = vpow2.f32 %v1328_v55 }
 0x486   :  { %v1998_v56 = vpop.eup %1796 }
 0x487   :  { %1332 = vrot.lane.b32.xlu0 %v1998_v56, %s1839_s4 }
 0x48a   :  { %v2002_v57 = vpop.eup %1798 }
 0x48b   :  { %1334 = vrot.lane.b32.xlu1 %v2002_v57, %s1839_s4 }
 0x4a6   :  { %1219 = vmax.xlane.f32.xlu0 %v1218_v58 }
 0x4af   :  { %1222 = vmax.xlane.f32.xlu1 %v1221_v59 }
 0x4f9   :  { %v1333_v60 = vpop.permute.xlu0 %1332 }
 0x4fa   :  { %v1338_v61 = vadd.f32 %v1998_v56, %v1333_v60 }
 0x4fc   :  { %1342 = vrot.lane.b32.xlu0 %v1338_v61, %s1840_s1 }
 0x4fd   :  { %v1335_v62 = vpop.permute.xlu1 %1334 }
 0x4fe   :  { %v1339_v63 = vadd.f32 %v2002_v57, %v1335_v62 }
 0x500   :  { %1344 = vrot.lane.b32.xlu1 %v1339_v63, %s1840_s1 }
 0x52f   :  { %v1220_v0 = vpop.xlane.xlu0 %1219 }
 0x530   :  { %v1224_v1 = vsub.f32 %v1970_v18, %v1220_v0 }
 0x532   :  { %v1226_v2 = vmul.f32 1.442695, %v1224_v1 }
 0x534   :  { %1800 = vpow2.f32 %v1226_v2 }
 0x538   :  { %v1223_v3 = vpop.xlane.xlu1 %1222 }
 0x539   :  { %v1225_v4 = vsub.f32 %v1974_v21, %v1223_v3 }
 0x53b   :  { %v1228_v5 = vmul.f32 1.442695, %v1225_v4 }
 0x53d   :  { %1802 = vpow2.f32 %v1228_v5 }
 0x541   :  { %v1801_v6 = vpop.eup %1800 }
 0x542   :  { %1232 = vrot.lane.b32.xlu0 %v1801_v6, %s1839_s4 }
 0x54a   :  { %v1803_v7 = vpop.eup %1802 }
 0x54b   :  { %1234 = vrot.lane.b32.xlu1 %v1803_v7, %s1839_s4 }
 0x56e   :  { %v1343_v8 = vpop.permute.xlu0 %1342 }
 0x56f   :  { %v1348_v9 = vadd.f32 %v1343_v8, %v1338_v61 }
 0x571   :  { %1352 = vrot.lane.b32.xlu0 %v1348_v9, %s1840_s1 }
 0x572   :  { %v1345_v10 = vpop.permute.xlu1 %1344 }
 0x573   :  { %v1349_v11 = vadd.f32 %v1345_v10, %v1339_v63 }
 0x575   :  { %1354 = vrot.lane.b32.xlu1 %v1349_v11, %s1840_s1  ;;  %1358 = vrot.lane.b32.xlu0 %v1348_v9, %s1839_s4 }
 0x579   :  { %1360 = vrot.lane.b32.xlu1 %v1349_v11, %s1839_s4  ;;  %1364 = vrot.lane.b32.xlu0 %v1348_v9, %s1836_s22 }
 0x57d   :  { %1366 = vrot.lane.b32.xlu1 %v1349_v11, %s1836_s22 }
 0x5b4   :  { %v1233_v12 = vpop.permute.xlu0 %1232 }
 0x5b5   :  { %v1239_v13 = vsel %vm1238_vm4, %v1233_v12, 0.0 }
 0x5b6   :  { %1240 = vadd.xlane.f32.xlu0 %v1239_v13 }
 0x5bd   :  { %v1235_v14 = vpop.permute.xlu1 %1234 }
 0x5be   :  { %v1242_v15 = vsel %vm1238_vm4, %v1235_v14, 0.0 }
 0x5bf   :  { %1243 = vadd.xlane.f32.xlu1 %v1242_v15 }
 0x5e3   :  { %v1353_v16 = vpop.permute.xlu0 %1352 }
 0x5e7   :  { %v1355_v17 = vpop.permute.xlu1 %1354  ;;  %v1359_v19 = vpop.permute.xlu0 %1358 }
 0x5e8   :  { %v1370_v20 = vsel %vm1307_vm0, %v1353_v16, %v1359_v19 }
 0x5e9   :  { %v1372_v23 = vsel %vm1310_vm1, %v1370_v20, %v1348_v9 }
 0x5eb   :  { %v1361_v22 = vpop.permute.xlu1 %1360  ;;  %v1365_v24 = vpop.permute.xlu0 %1364 }
 0x5ec   :  { %v1371_v25 = vsel %vm1307_vm0, %v1355_v17, %v1361_v22  ;;  %v1374_v26 = vsel %vm1313_vm2, %v1372_v23, %v1365_v24 }
 0x5ed   :  { %1804 = vrcp.f32 %v1374_v26  ;;  %v1373_v27 = vsel %vm1310_vm1, %v1371_v25, %v1349_v11 }
 0x5ef   :  { %v1367_v28 = vpop.permute.xlu1 %1366 }
 0x5f0   :  { %v1375_v29 = vsel %vm1313_vm2, %v1373_v27, %v1367_v28 }
 0x5f1   :  { %1806 = vrcp.f32 %v1375_v29 }
 0x5fa   :  { %v1805_v30 = vpop.eup %1804 }
 0x5fb   :  { %1380 = vrot.lane.b32.xlu0 %v1805_v30, %s1841_s25 }
 0x5fe   :  { %v1807_v31 = vpop.eup %1806 }
 0x5ff   :  { %1382 = vrot.lane.b32.xlu1 %v1807_v31, %s1841_s25 }
 0x63f   :  { %v1241_v32 = vpop.xlane.xlu0 %1240 }
 0x640   :  { %1808 = vrcp.f32 %v1241_v32 }
 0x648   :  { %v1244_v33 = vpop.xlane.xlu1 %1243 }
 0x649   :  { %1810 = vrcp.f32 %v1244_v33 }
 0x64d   :  { %v1809_v34 = vpop.eup %1808 }
 0x64e   :  { %v1247_v35 = vmul.f32 %v1809_v34, %v1801_v6 }
 0x650   :  { %v1388_v37 = vsel %vm1307_vm0, %v1970_v18, %v1247_v35 }
 0x651   :  { %v1391_v41 = vsel %vm1390_vm5, %v1388_v37, 0.0 }
 0x656   :  { %v1811_v36 = vpop.eup %1810 }
 0x657   :  { %v1248_v38 = vmul.f32 %v1811_v36, %v1803_v7 }
 0x659   :  { %v1389_v43 = vsel %vm1307_vm0, %v1974_v21, %v1248_v38 }
 0x65a   :  { %v1392_v46 = vsel %vm1390_vm5, %v1389_v43, 0.0 }
 0x66d   :  { %v1381_v39 = vpop.permute.xlu0 %1380 }
 0x66e   :  { %v1386_v40 = vmul.f32 %v1998_v56, %v1381_v39 }
 0x670   :  { %v1393_v42 = vsel %vm1310_vm1, %v1391_v41, %v1386_v40 }
 0x671   :  { %v1396_v44 = vsel %vm1395_vm6, %v1393_v42, 0.0  ;;  %v1383_v45 = vpop.permute.xlu1 %1382 }
 0x672   :  { %1398 = vst [vmem:[%s2049_s5] sm:$0xff] %v1396_v44  ;;  %v1387_v18 = vmul.f32 %v2002_v57, %v1383_v45 }
 0x674   :  { %v1394_v47 = vsel %vm1310_vm1, %v1392_v46, %v1387_v18 }
 0x675   :  { %v1397_v48 = vsel %vm1395_vm6, %v1394_v47, 0.0 }
 0x676   :  { %1399 = vst [vmem:[%s2049_s5 + $0x8] sm:$0xff] %v1397_v48 }
 0x677   :  { %1404 = vsyncpa [#allocation3], 1 }

</bundles_post_ra>
